<compile_context>
chip_gen: v5e
topology: v5e:2x2
jax: 0.10.0
libtpu: 0.0.40
codegen_flags: <defaults>
</compile_context>

<pallas_src>
import functools

import jax
import jax.numpy as jnp
from jax import lax
from jax.experimental import pallas as pl
from jax.experimental.pallas import tpu as pltpu

RANK = 16
HIDDEN = 64


def _round_up(x, m):
    return ((x + m - 1) // m) * m


# -----------------------------------------------------------------------------
# Phase 1 kernel: streaming K reduction  y_p += Vf_tile @ Rt_tile^T
# -----------------------------------------------------------------------------
def _phase1_kernel(vf_ref, rt_ref, y_ref, *, k_dim, tk, nk_inner):
    p = pl.program_id(0)
    k = pl.program_id(1)
    g = p * nk_inner + k                      # unclamped global K-tile index
    valid = k_dim - g * tk                    # real columns in this tile (<=0 for
                                              # clamped duplicate tiles)
    col = lax.broadcasted_iota(jnp.int32, (1, tk), 1)
    keep = col < valid
    vf = jnp.where(keep, vf_ref[...], 0.0)    # zero K tail / duplicate tiles
    rt = jnp.where(keep, rt_ref[...], 0.0)

    # (B, tk) x (RANK, tk) contracted on the lane axis -> (B, RANK), f32 acc.
    contrib = lax.dot_general(
        vf, rt, dimension_numbers=(((1,), (1,)), ((), ())),
        preferred_element_type=jnp.float32)

    @pl.when(k == 0)
    def _():
        y_ref[...] = jnp.zeros_like(y_ref)

    y_ref[0, :, :] = y_ref[0, :, :] + contrib


# -----------------------------------------------------------------------------
# Phase 2 kernels: out = (sum_p y_p) @ L (+ bias), lane-dense over N
# -----------------------------------------------------------------------------
def _phase2_bias_kernel(yp_ref, l_ref, b_ref, o_ref):
    y = jnp.sum(yp_ref[...], axis=0)                              # (B, RANK) f32
    out = jnp.dot(y, l_ref[...], preferred_element_type=jnp.float32)
    out = out + b_ref[...]                                        # (1, tn) bcast
    o_ref[...] = out.astype(o_ref.dtype)


def _phase2_nobias_kernel(yp_ref, l_ref, o_ref):
    y = jnp.sum(yp_ref[...], axis=0)
    out = jnp.dot(y, l_ref[...], preferred_element_type=jnp.float32)
    o_ref[...] = out.astype(o_ref.dtype)


# -----------------------------------------------------------------------------
# Weight generation (hoisted, one-time): depends only on (H, W, params).
# -----------------------------------------------------------------------------
def _cell_centered_unit_grid(h, w):
    # cell_centered_unit_grid((h, w)).permute(1, 2, 0): (H, W, 2)
    ys = (jnp.arange(h, dtype=jnp.float32) + 0.5) / h
    xs = (jnp.arange(w, dtype=jnp.float32) + 0.5) / w
    yy, xx = jnp.meshgrid(ys, xs, indexing="ij")
    return jnp.stack([yy, xx], axis=-1)


def _mlp(x, w1, b1, w2, b2):
    # nn.Linear(2, 64) -> nn.GELU() (exact) -> nn.Linear(64, n_out)
    # TODO(synk): exact erf-based GELU has no guaranteed Mosaic lowering, so the
    # coordinate MLPs stay in plain JAX; they run once per (H, W), not per call.
    h = jax.nn.gelu(x @ w1 + b1, approximate=False)
    return h @ w2 + b2


def build_operator_weights(params, in_channels, height, width):
    """One-time build of lane-dense f32, scale-folded operands.

    Returns:
      Rt       : (RANK, C_in*H*W) f32, with the 1/(H*W) scale folded in
      L        : (RANK, C_out*H*W) f32
      bias_row : (1, C_out*H*W) f32, or None
      c_out    : int
    """
    hw = height * width
    coords = _cell_centered_unit_grid(height, width).reshape(hw, 2)
    left = _mlp(coords, params["w11"], params["b11"], params["w12"], params["b12"])
    right = _mlp(coords, params["w21"], params["b21"], params["w22"], params["b22"])
    c_out = left.shape[-1] // RANK

    # Rt[r, i*HW + hw] = right_kernel[h, w, r, i] / (H*W)
    rt = (right.reshape(hw, RANK, in_channels).transpose(1, 2, 0)
          .reshape(RANK, in_channels * hw)) * (1.0 / float(hw))
    # L[r, o*HW + hw] = left_kernel[h, w, o, r]
    lmat = (left.reshape(hw, c_out, RANK).transpose(2, 1, 0)
            .reshape(RANK, c_out * hw))

    if params["bias"] is None:
        bias_row = None
    else:
        bias_row = jnp.broadcast_to(
            params["bias"].reshape(c_out, 1), (c_out, hw)
        ).reshape(1, c_out * hw).astype(jnp.float32)

    return rt.astype(jnp.float32), lmat.astype(jnp.float32), bias_row, c_out


# -----------------------------------------------------------------------------
# Per-call hot path.
# -----------------------------------------------------------------------------
def _pick_tk(batch, k_dim, target_block_bytes=6 * 1024 * 1024):
    # Size the K tile so one (Vf, Rt) block pair streams ~target_block_bytes
    # (sublane-padded f32): amortizes the ~0.35us per-grid-step overhead while the
    # double-buffered footprint stays far below the 64 MiB v7x VMEM.
    rows = _round_up(max(batch, 1), 8) + RANK
    tk = target_block_bytes // (rows * 4)
    tk = max(512, (tk // 128) * 128)
    return min(tk, _round_up(k_dim, 128))


@functools.partial(jax.jit, static_argnames=("tile_k", "tile_n"))
def lowrank_apply(v, rt, l, bias_row=None, *, tile_k=None, tile_n=None):
    B, c_in, H, W = v.shape
    hw = H * W
    K = c_in * hw
    N = l.shape[1]
    c_out = N // hw
    assert rt.shape == (RANK, K) and l.shape[0] == RANK and c_out * hw == N

    vf = v.reshape(B, K)                      # free reshape; f32, no HBM copy

    # ---- phase 1: y_p = partial (Vf @ Rt^T), single pass over K --------------
    tk = tile_k if tile_k is not None else _pick_tk(B, K)
    tk = min(_round_up(tk, 128), _round_up(K, 128))
    nk_total = pl.cdiv(K, tk)
    n_par = 2 if nk_total >= 2 else 1         # feed both v7x TensorCores
    nk_inner = pl.cdiv(nk_total, n_par)

    def k_idx(p, k):                          # clamp; duplicates masked in-kernel
        return (0, jnp.minimum(p * nk_inner + k, nk_total - 1))

    y_parts = pl.pallas_call(
        functools.partial(_phase1_kernel, k_dim=K, tk=tk, nk_inner=nk_inner),
        out_shape=jax.ShapeDtypeStruct((n_par, B, RANK), jnp.float32),
        grid=(n_par, nk_inner),
        in_specs=[pl.BlockSpec((B, tk), k_idx),        # Vf (f32, cast-free)
                  pl.BlockSpec((RANK, tk), k_idx)],    # Rt (lane-dense)
        out_specs=pl.BlockSpec((1, B, RANK), lambda p, k: (p, 0, 0)),
        compiler_params=pltpu.CompilerParams(
            dimension_semantics=("parallel", "arbitrary"),
            vmem_limit_bytes=48 * 1024 * 1024),
        cost_estimate=pl.CostEstimate(
            flops=2 * B * RANK * tk * n_par * nk_inner, transcendentals=0,
            bytes_accessed=4 * (B * K + RANK * K + n_par * B * RANK)),
    )(vf, rt)

    # ---- phase 2: out = (sum_p y_p) @ L + bias, lane-dense over N -------------
    tn = tile_n if tile_n is not None else 4096
    tn = min(_round_up(tn, 128), _round_up(N, 128))
    nn = pl.cdiv(N, tn)

    in_specs = [pl.BlockSpec((n_par, B, RANK), lambda j: (0, 0, 0)),
                pl.BlockSpec((RANK, tn), lambda j: (0, j))]
    operands = [y_parts, l]
    if bias_row is not None:
        in_specs.append(pl.BlockSpec((1, tn), lambda j: (0, j)))
        operands.append(bias_row)
        kernel2 = _phase2_bias_kernel
    else:
        kernel2 = _phase2_nobias_kernel

    out_flat = pl.pallas_call(
        kernel2,
        out_shape=jax.ShapeDtypeStruct((B, N), v.dtype),
        grid=(nn,),
        in_specs=in_specs,
        out_specs=pl.BlockSpec((B, tn), lambda j: (0, j)),
        compiler_params=pltpu.CompilerParams(
            dimension_semantics=("parallel",),
            vmem_limit_bytes=48 * 1024 * 1024),
        cost_estimate=pl.CostEstimate(
            flops=2 * B * RANK * N, transcendentals=0,
            bytes_accessed=4 * (RANK * N + B * N
                                + (N if bias_row is not None else 0)
                                + n_par * B * RANK * nn)),
    )(*operands)

    return out_flat.reshape(B, c_out, H, W)


def lowrank_linear_operator_2d(v, params):
    """Full forward matching the PyTorch module (rebuilds weights each call).
    For repeated calls at fixed (H, W), call build_operator_weights once and
    lowrank_apply per call."""
    _, c_in, H, W = v.shape
    rt, l, bias_row, _ = build_operator_weights(params, c_in, H, W)
    return lowrank_apply(v, rt, l, bias_row)


# -----------------------------------------------------------------------------
# Synthetic parameters + pure-JAX reference for the sanity check.
# -----------------------------------------------------------------------------
def init_params(key, in_channels, out_channels, bias=True):
    ks = jax.random.split(key, 9)

    def lin(kw, kb, fan_in, fan_out):
        bound = 1.0 / float(fan_in) ** 0.5
        w = jax.random.uniform(kw, (fan_in, fan_out), jnp.float32, -bound, bound)
        b = jax.random.uniform(kb, (fan_out,), jnp.float32, -bound, bound)
        return w, b

    w11, b11 = lin(ks[0], ks[1], 2, HIDDEN)                       # kernel1[0]
    w12, b12 = lin(ks[2], ks[3], HIDDEN, out_channels * RANK)     # kernel1[2]
    w21, b21 = lin(ks[4], ks[5], 2, HIDDEN)                       # kernel2[0]
    w22, b22 = lin(ks[6], ks[7], HIDDEN, RANK * in_channels)      # kernel2[2]
    params = dict(w11=w11, b11=b11, w12=w12, b12=b12,
                  w21=w21, b21=b21, w22=w22, b22=b22)
    if bias:
        stdv = 1.0 / float(in_channels) ** 0.5
        params["bias"] = jax.random.uniform(
            ks[8], (out_channels, 1, 1), jnp.float32, -stdv, stdv)
    else:
        params["bias"] = None
    return params


def _reference(v, params):
    B, c_in, H, W = v.shape
    coords = _cell_centered_unit_grid(H, W).reshape(-1, 2)
    left = _mlp(coords, params["w11"], params["b11"],
                params["w12"], params["b12"]).reshape(H, W, -1, RANK)
    right = _mlp(coords, params["w21"], params["b21"],
                 params["w22"], params["b22"]).reshape(H, W, RANK, c_in)
    y = jnp.einsum("hwri,bihw->br", right, v) / (H * W)
    out = jnp.einsum("hwor,br->bohw", left, y)
    if params["bias"] is not None:
        out = out + params["bias"][None]
    return out


if __name__ == "__main__":
    key = jax.random.PRNGKey(0)
    kp1, kv1, kp2, kv2 = jax.random.split(key, 4)

    # --- case 1: default tiling (single K tile), bias on ----------------------
    B, C_IN, C_OUT, H, W = 2, 4, 6, 16, 16
    params = init_params(kp1, C_IN, C_OUT, bias=True)
    v = jax.random.normal(kv1, (B, C_IN, H, W), jnp.float32)
    rt, l, bias_row, _ = build_operator_weights(params, C_IN, H, W)

    out = jax.block_until_ready(lowrank_apply(v, rt, l, bias_row))
    ref = _reference(v, params)
    assert out.shape == (B, C_OUT, H, W), out.shape
    assert bool(jnp.all(jnp.isfinite(out)))
    assert bool(jnp.allclose(out, ref, rtol=2e-2, atol=2e-2)), \
        float(jnp.max(jnp.abs(out - ref)))

    # --- case 2: forces the multi-K-tile path: K-tail masking, a clamped
    # duplicate tile on the parallel axis, boundary N blocks, no bias ----------
    B2, C2_IN, C2_OUT, H2, W2 = 3, 5, 6, 16, 12
    params2 = init_params(kp2, C2_IN, C2_OUT, bias=False)
    v2 = jax.random.normal(kv2, (B2, C2_IN, H2, W2), jnp.float32)
    rt2, l2, bias2, _ = build_operator_weights(params2, C2_IN, H2, W2)

    out2 = jax.block_until_ready(
        lowrank_apply(v2, rt2, l2, bias2, tile_k=384, tile_n=512))
    ref2 = _reference(v2, params2)
    assert out2.shape == (B2, C2_OUT, H2, W2), out2.shape
    assert bool(jnp.all(jnp.isfinite(out2)))
    assert bool(jnp.allclose(out2, ref2, rtol=2e-2, atol=2e-2)), \
        float(jnp.max(jnp.abs(out2 - ref2)))

    print("KERNEL_OK")
</pallas_src>

<mosaic_0001>
module attributes {stable_mosaic.version = 11 : i64} {
  func.func @_phase2_bias_kernel(%arg0: i32, %arg1: memref<1x2x16xf32, #tpu.memory_space<vmem>>, %arg2: memref<16x1536xf32, #tpu.memory_space<vmem>>, %arg3: memref<1x1536xf32, #tpu.memory_space<vmem>>, %arg4: memref<2x1536xf32, #tpu.memory_space<vmem>>) attributes {dimension_semantics = [#tpu.dimension_semantics<parallel>], iteration_bounds = array<i64: 1>, scalar_prefetch = 0 : i64, scratch_operands = 0 : i64, tpu.core_type = #tpu.core_type<tc>, window_params = [{pipeline_mode = #tpu.pipeline_mode<synchronous>, transform_indices = @transform_0, window_bounds = array<i64: 1, 2, 16>}, {transform_indices = @transform_1, window_bounds = array<i64: 16, 1536>}, {transform_indices = @transform_2, window_bounds = array<i64: 1, 1536>}, {transform_indices = @transform_3, window_bounds = array<i64: 2, 1536>}]} {
    %c0 = arith.constant 0 : index
    %c0_0 = arith.constant 0 : index
    %c0_1 = arith.constant 0 : index
    %0 = vector.load %arg1[%c0, %c0_0, %c0_1] : memref<1x2x16xf32, #tpu.memory_space<vmem>>, vector<1x2x16xf32>
    %cst = arith.constant dense<0.000000e+00> : vector<2x16xf32>
    %1 = vector.multi_reduction <add>, %0, %cst [0] : vector<1x2x16xf32> to vector<2x16xf32>
    %c0_2 = arith.constant 0 : index
    %c0_3 = arith.constant 0 : index
    %2 = vector.load %arg2[%c0_2, %c0_3] : memref<16x1536xf32, #tpu.memory_space<vmem>>, vector<16x1536xf32>
    %cst_4 = arith.constant dense<0.000000e+00> : vector<2x1536xf32>
    %3 = tpu.matmul %1, %2, %cst_4 {dimension_numbers = #tpu.dot_dimension_numbers<[1], [0], [0], [1], [0, 0, 1, 1], [], []>} : vector<2x16xf32>, vector<16x1536xf32>, vector<2x1536xf32> -> vector<2x1536xf32>
    %c0_5 = arith.constant 0 : index
    %c0_6 = arith.constant 0 : index
    %4 = vector.load %arg3[%c0_5, %c0_6] : memref<1x1536xf32, #tpu.memory_space<vmem>>, vector<1x1536xf32>
    %5 = vector.broadcast %4 : vector<1x1536xf32> to vector<2x1536xf32>
    %6 = arith.addf %3, %5 : vector<2x1536xf32>
    %c0_7 = arith.constant 0 : index
    %c0_8 = arith.constant 0 : index
    %7 = vector.load %arg4[%c0_7, %c0_8] : memref<2x1536xf32, #tpu.memory_space<vmem>>, vector<2x1536xf32>
    tpu.vector_store %arg4[%c0_7, %c0_8], %6 {strides = array<i32>} : memref<2x1536xf32, #tpu.memory_space<vmem>>, vector<2x1536xf32>,
    return
  }
  func.func @transform_0(%arg0: i32) -> (i32, i32, i32) {
    %c0_i32 = arith.constant 0 : i32
    %c0_i32_0 = arith.constant 0 : i32
    %c0_i32_1 = arith.constant 0 : i32
    %c0_i32_2 = arith.constant 0 : i32
    return %c0_i32, %c0_i32_0, %c0_i32_1 : i32, i32, i32
  }
  func.func @transform_1(%arg0: i32) -> (i32, i32) {
    %c0_i32 = arith.constant 0 : i32
    %c0_i32_0 = arith.constant 0 : i32
    return %c0_i32, %arg0 : i32, i32
  }
  func.func @transform_2(%arg0: i32) -> (i32, i32) {
    %c0_i32 = arith.constant 0 : i32
    %c0_i32_0 = arith.constant 0 : i32
    return %c0_i32, %arg0 : i32, i32
  }
  func.func @transform_3(%arg0: i32) -> (i32, i32) {
    %c0_i32 = arith.constant 0 : i32
    %c0_i32_0 = arith.constant 0 : i32
    return %c0_i32, %arg0 : i32, i32
  }
}

module attributes {stable_mosaic.version = 11 : i64} {
  func.func @_phase1_kernel(%arg0: i32, %arg1: i32, %arg2: memref<2x1024xf32, #tpu.memory_space<vmem>>, %arg3: memref<16x1024xf32, #tpu.memory_space<vmem>>, %arg4: memref<1x2x16xf32, #tpu.memory_space<vmem>>) attributes {dimension_semantics = [#tpu.dimension_semantics<parallel>, #tpu.dimension_semantics<arbitrary>], iteration_bounds = array<i64: 1, 1>, scalar_prefetch = 0 : i64, scratch_operands = 0 : i64, tpu.core_type = #tpu.core_type<tc>, window_params = [{transform_indices = @transform_0, window_bounds = array<i64: 2, 1024>}, {transform_indices = @transform_1, window_bounds = array<i64: 16, 1024>}, {transform_indices = @transform_2, window_bounds = array<i64: 1, 2, 16>}]} {
    %c1_i32 = arith.constant 1 : i32
    %0 = arith.muli %arg0, %c1_i32 : i32
    %1 = arith.addi %0, %arg1 : i32
    %c1024_i32 = arith.constant 1024 : i32
    %2 = arith.muli %1, %c1024_i32 : i32
    %c1024_i32_0 = arith.constant 1024 : i32
    %3 = arith.subi %c1024_i32_0, %2 : i32
    %4 = tpu.iota {dimensions = array<i32: 1>} : vector<1x1024xi32>
    %5 = vector.broadcast %3 : i32 to vector<1x1024xi32>
    %6 = arith.cmpi slt, %4, %5 : vector<1x1024xi32>
    %c0 = arith.constant 0 : index
    %c0_1 = arith.constant 0 : index
    %7 = vector.load %arg2[%c0, %c0_1] : memref<2x1024xf32, #tpu.memory_space<vmem>>, vector<2x1024xf32>
    %cst = arith.constant 0.000000e+00 : f32
    %8 = vector.shape_cast %6 : vector<1x1024xi1> to vector<1x1024xi1>
    %9 = vector.broadcast %8 : vector<1x1024xi1> to vector<2x1024xi1>
    %10 = vector.broadcast %cst : f32 to vector<2x1024xf32>
    %11 = arith.select %9, %7, %10 : vector<2x1024xi1>, vector<2x1024xf32>
    %c0_2 = arith.constant 0 : index
    %c0_3 = arith.constant 0 : index
    %12 = vector.load %arg3[%c0_2, %c0_3] : memref<16x1024xf32, #tpu.memory_space<vmem>>, vector<16x1024xf32>
    %cst_4 = arith.constant 0.000000e+00 : f32
    %13 = vector.shape_cast %6 : vector<1x1024xi1> to vector<1x1024xi1>
    %14 = vector.broadcast %13 : vector<1x1024xi1> to vector<16x1024xi1>
    %15 = vector.broadcast %cst_4 : f32 to vector<16x1024xf32>
    %16 = arith.select %14, %12, %15 : vector<16x1024xi1>, vector<16x1024xf32>
    %cst_5 = arith.constant dense<0.000000e+00> : vector<2x16xf32>
    %17 = tpu.matmul %11, %16, %cst_5 {dimension_numbers = #tpu.dot_dimension_numbers<[1], [1], [0], [0], [0, 0, 1, 0], [], []>} : vector<2x1024xf32>, vector<16x1024xf32>, vector<2x16xf32> -> vector<2x16xf32>
    %c0_i32 = arith.constant 0 : i32
    %18 = arith.cmpi eq, %arg1, %c0_i32 : i32
    %19 = arith.extui %18 : i1 to i32
    %c0_i32_6 = arith.constant 0 : i32
    %20 = arith.cmpi ne, %19, %c0_i32_6 : i32
    scf.if %20 {
      %cst_13 = arith.constant 0.000000e+00 : f32
      %27 = vector.broadcast %cst_13 : f32 to vector<1x2x16xf32>
      %c0_14 = arith.constant 0 : index
      %c0_15 = arith.constant 0 : index
      %c0_16 = arith.constant 0 : index
      %28 = vector.load %arg4[%c0_14, %c0_15, %c0_16] : memref<1x2x16xf32, #tpu.memory_space<vmem>>, vector<1x2x16xf32>
      tpu.vector_store %arg4[%c0_14, %c0_15, %c0_16], %27 {strides = array<i32>} : memref<1x2x16xf32, #tpu.memory_space<vmem>>, vector<1x2x16xf32>,
    } else {
    }
    %c0_7 = arith.constant 0 : index
    %c0_8 = arith.constant 0 : index
    %c0_9 = arith.constant 0 : index
    %21 = vector.load %arg4[%c0_7, %c0_8, %c0_9] : memref<1x2x16xf32, #tpu.memory_space<vmem>>, vector<1x2x16xf32>
    %22 = vector.shape_cast %21 : vector<1x2x16xf32> to vector<2x16xf32>
    %23 = arith.addf %22, %17 : vector<2x16xf32>
    %c0_10 = arith.constant 0 : index
    %c0_11 = arith.constant 0 : index
    %c0_12 = arith.constant 0 : index
    %24 = vector.load %arg4[%c0_10, %c0_11, %c0_12] : memref<1x2x16xf32, #tpu.memory_space<vmem>>, vector<1x2x16xf32>
    %25 = vector.shape_cast %24 : vector<1x2x16xf32> to vector<2x16xf32>
    %26 = vector.shape_cast %23 : vector<2x16xf32> to vector<1x2x16xf32>
    tpu.vector_store %arg4[%c0_10, %c0_11, %c0_12], %26 {strides = array<i32>} : memref<1x2x16xf32, #tpu.memory_space<vmem>>, vector<1x2x16xf32>,
    return
  }
  func.func @transform_0(%arg0: i32, %arg1: i32) -> (i32, i32) {
    %c1_i32 = arith.constant 1 : i32
    %0 = arith.muli %arg0, %c1_i32 : i32
    %1 = arith.addi %0, %arg1 : i32
    %c0_i32 = arith.constant 0 : i32
    %2 = arith.minsi %1, %c0_i32 : i32
    %c0_i32_0 = arith.constant 0 : i32
    %c0_i32_1 = arith.constant 0 : i32
    return %c0_i32_0, %2 : i32, i32
  }
  func.func @transform_1(%arg0: i32, %arg1: i32) -> (i32, i32) {
    %c1_i32 = arith.constant 1 : i32
    %0 = arith.muli %arg0, %c1_i32 : i32
    %1 = arith.addi %0, %arg1 : i32
    %c0_i32 = arith.constant 0 : i32
    %2 = arith.minsi %1, %c0_i32 : i32
    %c0_i32_0 = arith.constant 0 : i32
    %c0_i32_1 = arith.constant 0 : i32
    return %c0_i32_0, %2 : i32, i32
  }
  func.func @transform_2(%arg0: i32, %arg1: i32) -> (i32, i32, i32) {
    %c0_i32 = arith.constant 0 : i32
    %c0_i32_0 = arith.constant 0 : i32
    %c0_i32_1 = arith.constant 0 : i32
    return %arg0, %c0_i32, %c0_i32_0 : i32, i32, i32
  }
}

</mosaic_0001>

<bundles_post_ra>
// kernel: lowrank_apply.3
= control target key start
LH: loop header
LB: loop body
LE: loop exit
PB: predicated region body
PF: predicated region fallthrough
CT: control target
= control target key end

     0   :  { %vm68_vm0 = vcmask 130048   ;;  %vm333_vm1 = vcmask 1041408   ;;  %vm335_vm2 = vcmask 1045508   ;;  %vm337_vm3 = vcmask 1043456   ;;  %s498_s1 = inlined_call_operand.vmem [shape: f32[16,1536], index: 1, kind: input, shape index: {}]   ;;  %s499_s0 = inlined_call_operand.vmem [shape: f32[1,2,16], index: 0, kind: input, shape index: {}]   ;;  %s500_s2 = inlined_call_operand.vmem [shape: f32[1,1536], index: 2, kind: input, shape index: {}]   ;;  %s501_s3 = inlined_call_operand.vmem [shape: f32[2,1536], index: 3, kind: output, shape index: {}]  }
   0x1   :  { %v30_v0 = vld [vmem:[%s498_s1 + $0x70] sm:$0xff]  ;;  %v31_v1 = vld [vmem:[%s498_s1 + $0x78] sm:$0xff]  ;;  %v14_v4 = vld [vmem:[%s499_s0] sm:$0x3] }
   0x2   :  { %v18_v2 = vld [vmem:[%s498_s1 + $0x10] sm:$0xff]  ;;  %126 = vmatpush.msra.mxu2 %v30_v0  ;;  %146 = vmatpush.msra.mxu3 %v31_v1  ;;  %v19_v3 = vld [vmem:[%s498_s1 + $0x18] sm:$0xff]  ;;  %v29_v7 = vld [vmem:[%s498_s1 + $0x68] sm:$0xff] }
   0x3   :  { %v34_v5 = vld [vmem:[%s498_s1 + $0x90] sm:$0xff]  ;;  %v35_v6 = vld [vmem:[%s498_s1 + $0x98] sm:$0xff]  ;;  %v28_v8 = vld [vmem:[%s498_s1 + $0x60] sm:$0xff]  ;;  %106 = vmatpush.msra.mxu1 %v29_v7 }
   0x4   :  { %127 = vmatpush.msra.mxu2 %v18_v2  ;;  %147 = vmatpush.msra.mxu3 %v19_v3  ;;  %v22_v9 = vld [vmem:[%s498_s1 + $0x30] sm:$0xff]  ;;  %v23_v10 = vld [vmem:[%s498_s1 + $0x38] sm:$0xff]  ;;  %v17_v11 = vld [vmem:[%s498_s1 + $0x8] sm:$0xff] }
   0x5   :  { %357 = vmatmul.msk.f32.vlgmr.msra.gmra.mxu2 %vm68_vm0, %v14_v4  ;;  %358 = vmatmul.msk.f32.vlgmr.msra.gmra.mxu3 %vm68_vm0, %v14_v4  ;;  %v16_v12 = vld [vmem:[%s498_s1] sm:$0xff]  ;;  %v33_v13 = vld [vmem:[%s498_s1 + $0x88] sm:$0xff]  ;;  %v38_v15 = vld [vmem:[%s498_s1 + $0xb0] sm:$0xff] }
   0x6   :  { %206 = vmatpush.msrb.mxu2 %v34_v5  ;;  %226 = vmatpush.msrb.mxu3 %v35_v6  ;;  %v32_v14 = vld [vmem:[%s498_s1 + $0x80] sm:$0xff]  ;;  %v39_v16 = vld [vmem:[%s498_s1 + $0xb8] sm:$0xff]  ;;  %v21_v17 = vld [vmem:[%s498_s1 + $0x28] sm:$0xff] }
   0x7   :  { %86 = vmatpush.msra.mxu0 %v28_v8  ;;  %107 = vmatpush.msra.mxu1 %v17_v11  ;;  %v20_v18 = vld [vmem:[%s498_s1 + $0x20] sm:$0xff]  ;;  %v26_v19 = vld [vmem:[%s498_s1 + $0x50] sm:$0xff]  ;;  %v27_v20 = vld [vmem:[%s498_s1 + $0x58] sm:$0xff] }
   0x8   :  { %207 = vmatpush.msrb.mxu2 %v22_v9  ;;  %227 = vmatpush.msrb.mxu3 %v23_v10  ;;  %v37_v21 = vld [vmem:[%s498_s1 + $0xa8] sm:$0xff]  ;;  %v36_v22 = vld [vmem:[%s498_s1 + $0xa0] sm:$0xff] }
   0x9   :  { %87 = vmatpush.msra.mxu0 %v16_v12  ;;  %356 = vmatmul.msk.f32.vlgmr.msra.gmra.mxu1 %vm68_vm0, %v14_v4  ;;  %v25_v23 = vld [vmem:[%s498_s1 + $0x48] sm:$0xff]  ;;  %v24_v24 = vld [vmem:[%s498_s1 + $0x40] sm:$0xff] }
   0xa   :  { %355 = vmatmul.msk.f32.vlgmr.msra.gmra.mxu0 %vm68_vm0, %v14_v4  ;;  %186 = vmatpush.msrb.mxu1 %v33_v13  ;;  %v40_v25 = vld [vmem:[%s500_s2] sm:$0xff]  ;;  %v41_v56 = vld [vmem:[%s500_s2 + $0x8] sm:$0xf] }
   0xb   :  { %166 = vmatpush.msrb.mxu0 %v32_v14  ;;  %286 = vmatpush.msra.mxu2 %v38_v15  ;;  %v45_v26 = vperm.slane %v40_v25, 1  ;;  %v44_v27 = vperm.slane %v40_v25, 0  ;;  %v46_v28 = vperm.slane %v40_v25, 2  ;;  %v47_v29 = vperm.slane %v40_v25, 3 }
   0xc   :  { %306 = vmatpush.msra.mxu3 %v39_v16  ;;  %187 = vmatpush.msrb.mxu1 %v21_v17  ;;  %v49_v42 = vperm.slane %v40_v25, 5  ;;  %v48_v43 = vperm.slane %v40_v25, 4  ;;  %v50_v45 = vperm.slane %v40_v25, 6  ;;  %v51_v46 = vperm.slane %v40_v25, 7 }
   0xd   :  { %361 = vmatmul.msk.f32.vlgmr.msrb.gmra.mxu2 %vm68_vm0, %v14_v4  ;;  %362 = vmatmul.msk.f32.vlgmr.msrb.gmra.mxu3 %vm68_vm0, %v14_v4  ;;  %v53_v61 = vperm.slane %v41_v56, 1  ;;  %v52_v62 = vperm.slane %v41_v56, 0  ;;  %v54_v0 = vperm.slane %v41_v56, 2  ;;  %v55_v1 = vperm.slane %v41_v56, 3 }
   0xe   :  { %167 = vmatpush.msrb.mxu0 %v20_v18  ;;  %287 = vmatpush.msra.mxu2 %v26_v19 }
   0xf   :  { %307 = vmatpush.msra.mxu3 %v27_v20  ;;  %266 = vmatpush.msra.mxu1 %v37_v21 }
  0x10   :  { %246 = vmatpush.msra.mxu0 %v36_v22 }
  0x11   :  { %360 = vmatmul.msk.f32.vlgmr.msrb.gmra.mxu1 %vm68_vm0, %v14_v4 }
  0x12   :  { %359 = vmatmul.msk.f32.vlgmr.msrb.gmra.mxu0 %vm68_vm0, %v14_v4  ;;  %267 = vmatpush.msra.mxu1 %v25_v23 }
  0x13   :  { %247 = vmatpush.msra.mxu0 %v24_v24 }
  0x15   :  { %365 = vmatmul.msk.f32.vlgmr.msra.gmra.mxu2 %vm68_vm0, %v14_v4  ;;  %366 = vmatmul.msk.f32.vlgmr.msra.gmra.mxu3 %vm68_vm0, %v14_v4 }
  0x19   :  { %364 = vmatmul.msk.f32.vlgmr.msra.gmra.mxu1 %vm68_vm0, %v14_v4 }
  0x1a   :  { %363 = vmatmul.msk.f32.vlgmr.msra.gmra.mxu0 %vm68_vm0, %v14_v4 }
  0x86   :  { %v109_v30 = vpop.f32.mrf.mxu1 }
  0x87   :  { %v89_v31 = vpop.f32.mrf.mxu0  ;;  %v110_v32 = vadd.f32 %v109_v30, %v45_v26 }
  0x88   :  { %v129_v33 = vpop.f32.mrf.mxu2  ;;  %v149_v34 = vpop.f32.mrf.mxu3  ;;  %v90_v35 = vadd.f32 %v89_v31, %v44_v27 }
  0x89   :  { %v130_v36 = vadd.f32 %v129_v33, %v46_v28  ;;  %v150_v37 = vadd.f32 %v149_v34, %v47_v29  ;;  %v324_v38 = vrot.slane %v110_v32, 6 }
  0x8b   :  { %v325_v39 = vrot.slane %v130_v36, 4  ;;  %v326_v40 = vrot.slane %v150_v37, 2  ;;  %v334_v41 = vsel %vm333_vm1, %v90_v35, %v324_v38 }
  0x8d   :  { %v336_v44 = vsel %vm335_vm2, %v325_v39, %v326_v40 }
  0x8e   :  { %v338_v47 = vsel %vm337_vm3, %v334_v41, %v336_v44  ;;  %v189_v48 = vpop.f32.mrf.mxu1 }
  0x8f   :  { %348 = vst [vmem:[%s501_s3] sm:$0xff] %v338_v47  ;;  %v169_v49 = vpop.f32.mrf.mxu0  ;;  %v190_v50 = vadd.f32 %v189_v48, %v49_v42 }
  0x90   :  { %v209_v51 = vpop.f32.mrf.mxu2  ;;  %v229_v52 = vpop.f32.mrf.mxu3  ;;  %v170_v53 = vadd.f32 %v169_v49, %v48_v43 }
  0x91   :  { %v210_v54 = vadd.f32 %v209_v51, %v50_v45  ;;  %v230_v55 = vadd.f32 %v229_v52, %v51_v46  ;;  %v327_v57 = vrot.slane %v190_v50, 6 }
  0x93   :  { %v328_v58 = vrot.slane %v210_v54, 4  ;;  %v329_v59 = vrot.slane %v230_v55, 2  ;;  %v339_v60 = vsel %vm333_vm1, %v170_v53, %v327_v57 }
  0x95   :  { %v340_v63 = vsel %vm335_vm2, %v328_v58, %v329_v59 }
  0x96   :  { %v341_v2 = vsel %vm337_vm3, %v339_v60, %v340_v63  ;;  %v269_v3 = vpop.f32.mrf.mxu1 }
  0x97   :  { %349 = vst [vmem:[%s501_s3 + $0x8] sm:$0xff] %v341_v2  ;;  %v249_v4 = vpop.f32.mrf.mxu0  ;;  %v270_v5 = vadd.f32 %v269_v3, %v53_v61 }
  0x98   :  { %v289_v6 = vpop.f32.mrf.mxu2  ;;  %v309_v7 = vpop.f32.mrf.mxu3  ;;  %v250_v8 = vadd.f32 %v249_v4, %v52_v62 }
  0x99   :  { %v290_v9 = vadd.f32 %v289_v6, %v54_v0  ;;  %v310_v10 = vadd.f32 %v309_v7, %v55_v1  ;;  %v330_v11 = vrot.slane %v270_v5, 6 }
  0x9b   :  { %v331_v12 = vrot.slane %v290_v9, 4  ;;  %v332_v13 = vrot.slane %v310_v10, 2  ;;  %v342_v14 = vsel %vm333_vm1, %v250_v8, %v330_v11 }
  0x9d   :  { %v343_v15 = vsel %vm335_vm2, %v331_v12, %v332_v13 }
  0x9e   :  { %v344_v16 = vsel %vm337_vm3, %v342_v14, %v343_v15 }
  0x9f   :  { %350 = vst [vmem:[%s501_s3 + $0x10] sm:$0xff] %v344_v16 }

// kernel: lowrank_apply.2
= control target key start
LH: loop header
LB: loop body
LE: loop exit
PB: predicated region body
PF: predicated region fallthrough
CT: control target
= control target key end

     0   :  { %7 = vsyncpa [#allocation3], 0  ;;  %s382_s12 = smov [#allocation2]   ;;  %s383_s14 = smov 1024   ;;  %s421_s0 = inlined_call_operand.vmem [shape: f32[2,1024], index: 0, kind: input, shape index: {}]   ;;  %s422_s1 = inlined_call_operand.hbm [shape: f32[16,1024], index: 1, kind: input, shape index: {}]   ;;  %s423_s2 = inlined_call_operand.vmem [shape: f32[1,2,16], index: 2, kind: output, shape index: {}]  }
   0x1   :  { %s32_s11 = sshll.u32 %s422_s1, 4  ;;  %s34_s13 = sshll.u32 %s382_s12, 4  ;;  %s33_s11 = int_to_ptr.hbm [resolvable:$true] %s32_s11  ;;  %s35_s13 = int_to_ptr.vmem [resolvable:$true] %s34_s13 }
   0x2   :  { %s384_s15 = smov 64  }
   0x3   :  { %40 = dma.hbm_to_vmem [thread:$0]  %s33_s11, 2048, %s35_s13, [#allocation3], %s383_s14, %s383_s14, %s384_s15  }
   0x4   :  { %380 = dma.done.wait [#allocation3], 2048  }
   0x5   :  { %381 = vsyncadd [#allocation3], 4294965248  ;;  %v147_v0 = vld [vmem:[#allocation2 + $0x50] sm:$0xff]  ;;  %v145_v1 = vld [vmem:[#allocation2 + $0x40] sm:$0xff]  ;;  %vm333_vm0 = vcmask 123904   ;;  %v385_v26 = vmov 0.0  }
   0x6   :  { %v146_v2 = vld [vmem:[#allocation2 + $0x48] sm:$0xff]  ;;  %223 = vmatpush.xpose.msra.mxu2 %v147_v0  ;;  %183 = vmatpush.xpose.msra.mxu0 %v145_v1  ;;  %v148_v3 = vld [vmem:[#allocation2 + $0x58] sm:$0xff]  ;;  %v139_v4 = vld [vmem:[#allocation2 + $0x10] sm:$0xff]  ;;  %334 = vst.msk [vmem:[%s423_s2] sm:$0x3] %vm333_vm0, %v385_v26 }
   0x7   :  { %203 = vmatpush.xpose.msra.mxu1 %v146_v2  ;;  %243 = vmatpush.xpose.msra.mxu3 %v148_v3  ;;  %v137_v5 = vld [vmem:[#allocation2] sm:$0xff]  ;;  %v90_v6 = vld [vmem:[%s421_s0] sm:$0xff]  ;;  %v138_v7 = vld [vmem:[#allocation2 + $0x8] sm:$0xff] }
   0x8   :  { %v140_v8 = vld [vmem:[#allocation2 + $0x18] sm:$0xff]  ;;  %110 = vst [vmem:[#allocation1] ss:$4 sm:$0xff] %v90_v6  ;;  %v151_v9 = vld [vmem:[#allocation2 + $0x70] sm:$0xff]  ;;  %v149_v10 = vld [vmem:[#allocation2 + $0x60] sm:$0xff] }
   0x9   :  { %v152_v11 = vld [vmem:[#allocation2 + $0x78] sm:$0xff]  ;;  %v150_v12 = vld [vmem:[#allocation2 + $0x68] sm:$0xff]  ;;  %v91_v13 = vld [vmem:[%s421_s0 + $0x8] sm:$0xff] }
   0xa   :  { %224 = vmatpush.xpose.msra.mxu2 %v139_v4  ;;  %184 = vmatpush.xpose.msra.mxu0 %v137_v5  ;;  %112 = vst [vmem:[#allocation1 + $0x20] ss:$4 sm:$0xff] %v91_v13  ;;  %v143_v14 = vld [vmem:[#allocation2 + $0x30] sm:$0xff]  ;;  %v141_v15 = vld [vmem:[#allocation2 + $0x20] sm:$0xff]  ;;  %v144_v16 = vld [vmem:[#allocation2 + $0x38] sm:$0xff] }
   0xb   :  { %204 = vmatpush.xpose.msra.mxu1 %v138_v7  ;;  %244 = vmatpush.xpose.msra.mxu3 %v140_v8  ;;  %v142_v17 = vld [vmem:[#allocation2 + $0x28] sm:$0xff] }
   0xd   :  { %v335_v41 = vld [vmem:[%s423_s2] sm:$0x3] }
   0xe   :  { %303 = vmatpush.xpose.msrb.mxu2 %v151_v9  ;;  %263 = vmatpush.xpose.msrb.mxu0 %v149_v10 }
   0xf   :  { %323 = vmatpush.xpose.msrb.mxu3 %v152_v11  ;;  %283 = vmatpush.xpose.msrb.mxu1 %v150_v12  ;;  %v115_v18 = vld.sshfl [vmem:[#allocation1 + $0x10] sm:$0xff pattern:$0x73625140]  ;;  %v113_v19 = vld.sshfl [vmem:[#allocation1] sm:$0xff pattern:$0x73625140] }
  0x10   :  { %225 = vmatmul.f32.vlgmr.msra.gmra.mxu2 %v115_v18  ;;  %185 = vmatmul.f32.vlgmr.msra.gmra.mxu0 %v113_v19  ;;  %v114_v20 = vld.sshfl [vmem:[#allocation1 + $0x8] sm:$0xff pattern:$0x73625140]  ;;  %v116_v21 = vld.sshfl [vmem:[#allocation1 + $0x18] sm:$0xff pattern:$0x73625140] }
  0x11   :  { %205 = vmatmul.f32.vlgmr.msra.gmra.mxu1 %v114_v20  ;;  %245 = vmatmul.f32.vlgmr.msra.gmra.mxu3 %v116_v21  ;;  %v119_v22 = vld.sshfl [vmem:[#allocation1 + $0x30] sm:$0xff pattern:$0x73625140]  ;;  %v117_v23 = vld.sshfl [vmem:[#allocation1 + $0x20] sm:$0xff pattern:$0x73625140] }
  0x12   :  { %304 = vmatpush.xpose.msrb.mxu2 %v143_v14  ;;  %264 = vmatpush.xpose.msrb.mxu0 %v141_v15  ;;  %v120_v24 = vld.sshfl [vmem:[#allocation1 + $0x38] sm:$0xff pattern:$0x73625140]  ;;  %v118_v25 = vld.sshfl [vmem:[#allocation1 + $0x28] sm:$0xff pattern:$0x73625140] }
  0x13   :  { %324 = vmatpush.xpose.msrb.mxu3 %v144_v16  ;;  %284 = vmatpush.xpose.msrb.mxu1 %v142_v17 }
  0x18   :  { %305 = vmatmul.f32.vlgmr.msrb.gmra.mxu2 %v119_v22  ;;  %265 = vmatmul.f32.vlgmr.msrb.gmra.mxu0 %v117_v23 }
  0x19   :  { %325 = vmatmul.f32.vlgmr.msrb.gmra.mxu3 %v120_v24  ;;  %285 = vmatmul.f32.vlgmr.msrb.gmra.mxu1 %v118_v25 }
  0x8d   :  { %v186_v27 = vpop.f32.mrf.mxu0 }
  0x8e   :  { %v206_v28 = vpop.f32.mrf.mxu1 }
  0x8f   :  { %v207_v29 = vadd.f32 %v206_v28, %v186_v27 }
  0x93   :  { %v226_v30 = vpop.f32.mrf.mxu2 }
  0x94   :  { %v227_v31 = vadd.f32 %v226_v30, %v207_v29  ;;  %v246_v32 = vpop.f32.mrf.mxu3 }
  0x95   :  { %v266_v33 = vpop.f32.mrf.mxu0 }
  0x96   :  { %v247_v34 = vadd.f32 %v246_v32, %v227_v31  ;;  %v286_v35 = vpop.f32.mrf.mxu1 }
  0x98   :  { %v267_v36 = vadd.f32 %v266_v33, %v247_v34 }
  0x9a   :  { %v287_v37 = vadd.f32 %v286_v35, %v267_v36 }
  0x9b   :  { %v306_v38 = vpop.f32.mrf.mxu2 }
  0x9c   :  { %v307_v39 = vadd.f32 %v306_v38, %v287_v37  ;;  %v326_v40 = vpop.f32.mrf.mxu3 }
  0x9e   :  { %v327_v42 = vadd.f32 %v326_v40, %v307_v39 }
  0xa0   :  { %v336_v43 = vadd.f32 %v335_v41, %v327_v42 }
  0xa2   :  { %338 = vst.msk [vmem:[%s423_s2] sm:$0x3] %vm333_vm0, %v336_v43 }
  0xa3   :  { %343 = vsyncpa [#allocation3], 1 }

</bundles_post_ra>
